<compile_context>
chip_gen: v5e
topology: v5e:2x2
jax: 0.10.0
libtpu: 0.0.40
codegen_flags: <defaults>
</compile_context>

<pallas_src>
import functools

import jax
import jax.numpy as jnp
from jax import lax
from jax.experimental import pallas as pl
from jax.experimental.pallas import tpu as pltpu

LEAKY_SLOPE = 0.2
MASK_VALUE = -9e16  # reference uses -9e16; do NOT use -inf (NaN on empty rows)


def _round_up(x, m):
    return ((x + m - 1) // m) * m


def _gat_kernel(h_full_ref, h_blk_ref, adj_ref, w_ref, asrc_ref, adst_ref,
                hp_ref, *attn_refs, mxu_bf16, exp_bf16):
    # h_full_ref: (N, Fin)            all nodes (needed for target scores / agg)
    # h_blk_ref:  (TQ, Fin)           this step's query-row block
    # adj_ref:    (TQ, N)             adjacency rows of this block (any dtype)
    # w_ref:      (Fin, n_heads*H)    all heads' W, head blocks adjacent on lanes
    # asrc_ref:   (n_heads*H, n_heads) col k = a_src of head k (block diagonal)
    # adst_ref:   (n_heads, n_heads*H) row k = a_dst of head k (block diagonal)
    # hp_ref:     (TQ, n_heads*H)     concatenated head outputs (lane-dense)
    # attn_refs:  optionally ((n_heads, TQ, N),) per-head attention rows
    attn_ref = attn_refs[0] if attn_refs else None

    h_full = h_full_ref[...]
    h_q = h_blk_ref[...]
    w = w_ref[...]
    a_src = asrc_ref[...]
    a_dst = adst_ref[...]

    n_heads = asrc_ref.shape[1]
    hh = hp_ref.shape[1]
    head_dim = hh // n_heads

    # One MXU matmul for every head's linear transform (all nodes + row block).
    ht_all = jnp.dot(h_full, w, preferred_element_type=jnp.float32)   # (N, HH)
    ht_q = jnp.dot(h_q, w, preferred_element_type=jnp.float32)        # (TQ, HH)
    # TODO(synk): F.dropout on h_transformed / attention is identity (eval mode).

    # All heads' source scores for this row block in one MXU matmul: (TQ, n_heads).
    src_q = jnp.dot(ht_q, a_src, preferred_element_type=jnp.float32)
    # All heads' target scores for every node, produced already transposed
    # (contract over features on the MXU -> no XLU transpose): (n_heads, N).
    tgt_all_t = lax.dot_general(
        a_dst, ht_all,
        dimension_numbers=(((1,), (1,)), ((), ())),
        preferred_element_type=jnp.float32)

    mask = adj_ref[...] > 0                      # hoisted out of the head loop
    neg = jnp.float32(MASK_VALUE)

    hp_parts = []
    for k in range(n_heads):                     # static python loop (n_heads small)
        # e[i, j] = src_k[i] + tgt_k[j]
        e = src_q[:, k:k + 1] + tgt_all_t[k:k + 1, :]            # (TQ, N)
        # LeakyReLU (single max since slope in (0, 1)).
        e = jnp.maximum(e, LEAKY_SLOPE * e)
        # Mask non-edges, softmax over last dim. Rows with no edges degenerate
        # to a uniform distribution (matches the PyTorch -9e16 trick).
        e = jnp.where(mask, e, neg)
        m = jnp.max(e, axis=-1, keepdims=True)
        x = e - m
        if exp_bf16:
            p = jnp.exp(x.astype(jnp.bfloat16)).astype(jnp.float32)
        else:
            p = jnp.exp(x)
        s = jnp.sum(p, axis=-1, keepdims=True)
        # Exact reciprocal: rows sum to 1 to f32 precision (the approx form
        # only reaches ~1e-3); cost is negligible (column of size TQ).
        attn = p * pl.reciprocal(s, approx=False)                # (TQ, N)
        if attn_ref is not None:
            attn_ref[k] = attn.astype(attn_ref.dtype)

        # Aggregate neighbor features on the MXU.
        ht_k = ht_all[:, k * head_dim:(k + 1) * head_dim]        # (N, H)
        if mxu_bf16:
            hp_k = jnp.dot(attn.astype(jnp.bfloat16),
                           ht_k.astype(jnp.bfloat16),
                           preferred_element_type=jnp.float32)
        else:
            hp_k = jnp.dot(attn, ht_k, preferred_element_type=jnp.float32)
        hp_parts.append(hp_k)

    # Single lane-dense store of the concatenated head outputs.
    hp_ref[...] = jnp.concatenate(hp_parts, axis=-1).astype(hp_ref.dtype)


def multi_head_gat_forward(h, adj, W_stack, a_stack, *, concat=True,
                           return_attention=True, attn_dtype=jnp.float32,
                           mxu_bf16=True, exp_bf16=False, block_q=None):
    """h: (N, Fin) f32, adj: (N, N) (any dtype; only `adj > 0` is used),
    W_stack: (n_heads, Fin, H), a_stack: (n_heads, 2, H).

    Returns (output, attn) where output is (N, n_heads*H) if concat else (N, H);
    attn is (n_heads, N, N) (dtype attn_dtype) or None if return_attention=False.
    Set mxu_bf16=False for exact f32 parity with the PyTorch module."""
    N, Fin = h.shape
    n_heads, _, H = W_stack.shape
    HH = n_heads * H

    # ---- pad N so the big adj/attn streams stay lane/sublane aligned --------
    N_pad = _round_up(N, 128) if N > 64 else _round_up(N, 8)
    if N_pad != N:
        h = jnp.pad(h, ((0, N_pad - N), (0, 0)))
        adj = jnp.pad(adj, ((0, N_pad - N), (0, N_pad - N)))

    if block_q is None:
        block_q = 128 if (N_pad > 128 and N_pad % 128 == 0) else N_pad
    assert N_pad % block_q == 0, "block_q must divide the padded node count"
    n_blocks = N_pad // block_q

    # ---- fuse per-head params into lane-dense block-diagonal operands -------
    # W_all[f, k*H + d] = W_stack[k, f, d]  -> ht_all[:, k*H:(k+1)*H] = h @ W_k
    W_all = jnp.transpose(W_stack, (1, 0, 2)).reshape(Fin, HH).astype(jnp.float32)
    eye = jnp.eye(n_heads, dtype=jnp.float32)
    a_src_h = a_stack[:, 0, :].astype(jnp.float32)              # (n_heads, H)
    a_dst_h = a_stack[:, 1, :].astype(jnp.float32)              # (n_heads, H)
    A_src = (a_src_h[:, :, None] * eye[:, None, :]).reshape(HH, n_heads)
    A_dst = (eye[:, :, None] * a_dst_h[None, :, :]).reshape(n_heads, HH)

    in_specs = [
        pl.BlockSpec((N_pad, Fin), lambda i: (0, 0)),      # h, all nodes
        pl.BlockSpec((block_q, Fin), lambda i: (i, 0)),    # h, this row block
        pl.BlockSpec((block_q, N_pad), lambda i: (i, 0)),  # adj row block
        pl.BlockSpec((Fin, HH), lambda i: (0, 0)),         # W (all heads)
        pl.BlockSpec((HH, n_heads), lambda i: (0, 0)),     # a_src block-diag
        pl.BlockSpec((n_heads, HH), lambda i: (0, 0)),     # a_dst block-diag
    ]
    out_shapes = [jax.ShapeDtypeStruct((N_pad, HH), jnp.float32)]
    out_specs = [pl.BlockSpec((block_q, HH), lambda i: (i, 0))]
    if return_attention:
        out_shapes.append(
            jax.ShapeDtypeStruct((n_heads, N_pad, N_pad), attn_dtype))
        out_specs.append(
            pl.BlockSpec((n_heads, block_q, N_pad), lambda i: (0, i, 0)))

    # ---- explicit VMEM budget (double-buffered streams + temporaries) -------
    adj_bytes = jnp.dtype(adj.dtype).itemsize
    attn_bytes = jnp.dtype(attn_dtype).itemsize if return_attention else 0
    per_step = (2 * block_q * N_pad * adj_bytes
                + 2 * n_heads * block_q * N_pad * attn_bytes
                + 2 * block_q * HH * 4
                + N_pad * (Fin + HH) * 4
                + 6 * block_q * N_pad * 4)
    vmem_limit = int(min(max(2 * per_step, 32 * 1024 * 1024), 64 * 1024 * 1024))

    flops = (n_blocks * 2 * (N_pad + block_q) * Fin * HH   # linear transform
             + 2 * n_heads * N_pad * N_pad * H             # aggregation
             + 8 * n_heads * N_pad * N_pad)                # softmax elementwise
    bytes_accessed = (n_blocks * N_pad * Fin * 4
                      + N_pad * N_pad * adj_bytes
                      + N_pad * HH * 4
                      + n_heads * N_pad * N_pad * attn_bytes)

    results = pl.pallas_call(
        functools.partial(_gat_kernel, mxu_bf16=mxu_bf16, exp_bf16=exp_bf16),
        out_shape=tuple(out_shapes),
        grid_spec=pltpu.PrefetchScalarGridSpec(
            num_scalar_prefetch=0,
            grid=(n_blocks,),
            in_specs=in_specs,
            out_specs=out_specs),
        compiler_params=pltpu.CompilerParams(
            dimension_semantics=("parallel",),   # row blocks are independent
            vmem_limit_bytes=vmem_limit),
        cost_estimate=pl.CostEstimate(
            flops=int(flops),
            transcendentals=int(n_heads * N_pad * N_pad),
            bytes_accessed=int(bytes_accessed)),
    )(h, h, adj, W_all, A_src, A_dst)

    if return_attention:
        hp, attn_pad = results
        attn_out = attn_pad[:, :N, :N]
    else:
        hp = results[0] if isinstance(results, (tuple, list)) else results
        attn_out = None
    hp = hp[:N]

    if concat:
        out = hp                                  # already torch.cat layout
    else:
        out = jnp.mean(hp.reshape(N, n_heads, H), axis=1)
    return out, attn_out


# ----------------------------- reference (pure JAX) --------------------------
def _gat_reference(h, adj, W_stack, a_stack, concat=True):
    n_heads = W_stack.shape[0]
    outs, attns = [], []
    for k in range(n_heads):
        ht = h @ W_stack[k]
        src = ht @ a_stack[k, 0][:, None]
        tgt = ht @ a_stack[k, 1][:, None]
        e = src + tgt.T
        e = jnp.where(e > 0, e, LEAKY_SLOPE * e)
        e = jnp.where(adj > 0, e, MASK_VALUE)
        attn = jax.nn.softmax(e, axis=-1)
        outs.append(attn @ ht)
        attns.append(attn)
    out = (jnp.concatenate(outs, axis=1) if concat
           else jnp.mean(jnp.stack(outs), axis=0))
    return out, jnp.stack(attns)


def _xavier_normal(key, shape):
    fan_in, fan_out = shape[0], shape[1]
    std = jnp.sqrt(2.0 / (fan_in + fan_out))
    return std * jax.random.normal(key, shape, dtype=jnp.float32)


if __name__ == "__main__":
    # ---------- run 1: exact f32 parity with the PyTorch module --------------
    # Config: in_features=8, out_features=32, n_heads=4, concat=True -> H=8.
    N, IN_F, OUT_F, HEADS = 16, 8, 32, 4
    HID = OUT_F // HEADS

    key = jax.random.PRNGKey(0)
    k_h, k_adj, *k_params = jax.random.split(key, 2 + 2 * HEADS)

    h = jax.random.normal(k_h, (N, IN_F), dtype=jnp.float32)
    adj = (jax.random.uniform(k_adj, (N, N)) > 0.5).astype(jnp.float32)
    adj = jnp.maximum(adj, jnp.eye(N, dtype=jnp.float32))     # self loops

    W_list, a_list = [], []
    for i in range(HEADS):
        W_list.append(_xavier_normal(k_params[2 * i], (IN_F, HID)))
        a_full = _xavier_normal(k_params[2 * i + 1], (2 * HID, 1))
        a_list.append(a_full.reshape(2, HID))                 # rows: src, dst
    W_stack = jnp.stack(W_list)                               # (heads, Fin, H)
    a_stack = jnp.stack(a_list)                               # (heads, 2, H)

    out, attn = multi_head_gat_forward(h, adj, W_stack, a_stack, concat=True,
                                       mxu_bf16=False,        # exact f32 path
                                       attn_dtype=jnp.float32)
    out = jax.block_until_ready(out)
    attn = jax.block_until_ready(attn)

    assert out.shape == (N, OUT_F)
    assert attn.shape == (HEADS, N, N)
    row_sums = jnp.sum(attn.astype(jnp.float32), axis=-1)
    assert bool(jnp.all(jnp.abs(row_sums - 1.0) < 1e-3)), "softmax rows != 1"

    out_ref, attn_ref = _gat_reference(h, adj, W_stack, a_stack, concat=True)
    assert bool(jnp.allclose(out, out_ref, atol=5e-2, rtol=5e-2)), "output mismatch"
    assert bool(jnp.allclose(attn, attn_ref, atol=5e-2, rtol=5e-2)), "attention mismatch"

    # ---------- run 2: tiled / padded / bf16-optimized path ------------------
    # N=200 pads to 256 -> grid of 2 parallel row blocks of 128; bf16 adjacency
    # halves the N^2 input stream; bf16 attention halves the writeback.
    N2, IN2, HEADS2, HID2 = 200, 16, 2, 32
    key2 = jax.random.PRNGKey(0)
    k_h2, k_adj2, k_w2, k_a2 = jax.random.split(key2, 4)
    h2 = jax.random.normal(k_h2, (N2, IN2), dtype=jnp.float32)
    adj2_f = (jax.random.uniform(k_adj2, (N2, N2)) > 0.5).astype(jnp.float32)
    adj2_f = jnp.maximum(adj2_f, jnp.eye(N2, dtype=jnp.float32))
    adj2 = adj2_f.astype(jnp.bfloat16)                        # 0/1 exact in bf16
    W2 = 0.2 * jax.random.normal(k_w2, (HEADS2, IN2, HID2), dtype=jnp.float32)
    a2 = 0.2 * jax.random.normal(k_a2, (HEADS2, 2, HID2), dtype=jnp.float32)

    out2, attn2 = multi_head_gat_forward(h2, adj2, W2, a2, concat=True,
                                         mxu_bf16=True,
                                         attn_dtype=jnp.bfloat16)
    out2 = jax.block_until_ready(out2)
    attn2 = jax.block_until_ready(attn2)
    assert out2.shape == (N2, HEADS2 * HID2)
    assert attn2.shape == (HEADS2, N2, N2)
    row_sums2 = jnp.sum(attn2.astype(jnp.float32), axis=-1)
    assert bool(jnp.all(jnp.abs(row_sums2 - 1.0) < 2e-2)), "bf16 softmax rows"
    edge = (adj2_f > 0)[None]
    masked_max = jnp.max(jnp.where(edge, 0.0, attn2.astype(jnp.float32)))
    assert float(masked_max) < 1e-6, "attention leaked onto non-edges"

    # Optional-attention path (skips the dominant n_heads*N^2 HBM write).
    out3, no_attn = multi_head_gat_forward(h2, adj2, W2, a2, concat=True,
                                           return_attention=False)
    out3 = jax.block_until_ready(out3)
    assert out3.shape == (N2, HEADS2 * HID2)
    assert no_attn is None

    print("KERNEL_OK")
</pallas_src>

<mosaic_0001>
module attributes {stable_mosaic.version = 11 : i64} {
  func.func @_gat_kernel(%arg0: i32, %arg1: memref<16x8xf32, #tpu.memory_space<vmem>>, %arg2: memref<16x8xf32, #tpu.memory_space<vmem>>, %arg3: memref<16x16xf32, #tpu.memory_space<vmem>>, %arg4: memref<8x32xf32, #tpu.memory_space<vmem>>, %arg5: memref<32x4xf32, #tpu.memory_space<vmem>>, %arg6: memref<4x32xf32, #tpu.memory_space<vmem>>, %arg7: memref<16x32xf32, #tpu.memory_space<vmem>>, %arg8: memref<4x16x16xf32, #tpu.memory_space<vmem>>) attributes {dimension_semantics = [#tpu.dimension_semantics<parallel>], iteration_bounds = array<i64: 1>, scalar_prefetch = 0 : i64, scratch_operands = 0 : i64, tpu.core_type = #tpu.core_type<tc>, window_params = [{pipeline_mode = #tpu.pipeline_mode<synchronous>, transform_indices = @transform_0, window_bounds = array<i64: 16, 8>}, {transform_indices = @transform_1, window_bounds = array<i64: 16, 8>}, {transform_indices = @transform_2, window_bounds = array<i64: 16, 16>}, {pipeline_mode = #tpu.pipeline_mode<synchronous>, transform_indices = @transform_3, window_bounds = array<i64: 8, 32>}, {pipeline_mode = #tpu.pipeline_mode<synchronous>, transform_indices = @transform_4, window_bounds = array<i64: 32, 4>}, {pipeline_mode = #tpu.pipeline_mode<synchronous>, transform_indices = @transform_5, window_bounds = array<i64: 4, 32>}, {transform_indices = @transform_6, window_bounds = array<i64: 16, 32>}, {transform_indices = @transform_7, window_bounds = array<i64: 4, 16, 16>}]} {
    %c0 = arith.constant 0 : index
    %c0_0 = arith.constant 0 : index
    %0 = vector.load %arg1[%c0, %c0_0] : memref<16x8xf32, #tpu.memory_space<vmem>>, vector<16x8xf32>
    %c0_1 = arith.constant 0 : index
    %c0_2 = arith.constant 0 : index
    %1 = vector.load %arg2[%c0_1, %c0_2] : memref<16x8xf32, #tpu.memory_space<vmem>>, vector<16x8xf32>
    %c0_3 = arith.constant 0 : index
    %c0_4 = arith.constant 0 : index
    %2 = vector.load %arg4[%c0_3, %c0_4] : memref<8x32xf32, #tpu.memory_space<vmem>>, vector<8x32xf32>
    %c0_5 = arith.constant 0 : index
    %c0_6 = arith.constant 0 : index
    %3 = vector.load %arg5[%c0_5, %c0_6] : memref<32x4xf32, #tpu.memory_space<vmem>>, vector<32x4xf32>
    %c0_7 = arith.constant 0 : index
    %c0_8 = arith.constant 0 : index
    %4 = vector.load %arg6[%c0_7, %c0_8] : memref<4x32xf32, #tpu.memory_space<vmem>>, vector<4x32xf32>
    %cst = arith.constant dense<0.000000e+00> : vector<16x32xf32>
    %5 = tpu.matmul %0, %2, %cst {dimension_numbers = #tpu.dot_dimension_numbers<[1], [0], [0], [1], [0, 0, 1, 1], [], []>} : vector<16x8xf32>, vector<8x32xf32>, vector<16x32xf32> -> vector<16x32xf32>
    %cst_9 = arith.constant dense<0.000000e+00> : vector<16x32xf32>
    %6 = tpu.matmul %1, %2, %cst_9 {dimension_numbers = #tpu.dot_dimension_numbers<[1], [0], [0], [1], [0, 0, 1, 1], [], []>} : vector<16x8xf32>, vector<8x32xf32>, vector<16x32xf32> -> vector<16x32xf32>
    %cst_10 = arith.constant dense<0.000000e+00> : vector<16x4xf32>
    %7 = tpu.matmul %6, %3, %cst_10 {dimension_numbers = #tpu.dot_dimension_numbers<[1], [0], [0], [1], [0, 0, 1, 1], [], []>} : vector<16x32xf32>, vector<32x4xf32>, vector<16x4xf32> -> vector<16x4xf32>
    %cst_11 = arith.constant dense<0.000000e+00> : vector<4x16xf32>
    %8 = tpu.matmul %4, %5, %cst_11 {dimension_numbers = #tpu.dot_dimension_numbers<[1], [1], [0], [0], [0, 0, 1, 0], [], []>} : vector<4x32xf32>, vector<16x32xf32>, vector<4x16xf32> -> vector<4x16xf32>
    %c0_12 = arith.constant 0 : index
    %c0_13 = arith.constant 0 : index
    %9 = vector.load %arg3[%c0_12, %c0_13] : memref<16x16xf32, #tpu.memory_space<vmem>>, vector<16x16xf32>
    %cst_14 = arith.constant 0.000000e+00 : f32
    %10 = vector.broadcast %cst_14 : f32 to vector<16x16xf32>
    %11 = arith.cmpf ogt, %9, %10 : vector<16x16xf32>
    %12 = vector.extract_strided_slice %7 {offsets = [0, 0], sizes = [16, 1], strides = [1, 1]} : vector<16x4xf32> to vector<16x1xf32>
    %13 = vector.extract_strided_slice %8 {offsets = [0, 0], sizes = [1, 16], strides = [1, 1]} : vector<4x16xf32> to vector<1x16xf32>
    %14 = vector.broadcast %12 : vector<16x1xf32> to vector<16x16xf32>
    %15 = vector.broadcast %13 : vector<1x16xf32> to vector<16x16xf32>
    %16 = arith.addf %14, %15 : vector<16x16xf32>
    %cst_15 = arith.constant 2.000000e-01 : f32
    %17 = vector.broadcast %cst_15 : f32 to vector<16x16xf32>
    %18 = arith.mulf %17, %16 : vector<16x16xf32>
    %19 = arith.maximumf %16, %18 : vector<16x16xf32>
    %cst_16 = arith.constant -9.000000e+16 : f32
    %20 = vector.broadcast %cst_16 : f32 to vector<16x16xf32>
    %21 = arith.select %11, %19, %20 : vector<16x16xi1>, vector<16x16xf32>
    %cst_17 = arith.constant dense<0xFF800000> : vector<16xf32>
    %22 = vector.multi_reduction <maximumf>, %21, %cst_17 [1] : vector<16x16xf32> to vector<16xf32>
    %23 = vector.shape_cast %22 : vector<16xf32> to vector<16x1xf32>
    %24 = vector.broadcast %23 : vector<16x1xf32> to vector<16x16xf32>
    %25 = arith.subf %21, %24 : vector<16x16xf32>
    %26 = math.exp %25 : vector<16x16xf32>
    %cst_18 = arith.constant dense<0.000000e+00> : vector<16xf32>
    %27 = vector.multi_reduction <add>, %26, %cst_18 [1] : vector<16x16xf32> to vector<16xf32>
    %28 = vector.shape_cast %27 : vector<16xf32> to vector<16x1xf32>
    %29 = tpu.reciprocal %28 : vector<16x1xf32> -> vector<16x1xf32>
    %30 = vector.broadcast %29 : vector<16x1xf32> to vector<16x16xf32>
    %31 = arith.mulf %26, %30 : vector<16x16xf32>
    %c0_19 = arith.constant 0 : index
    %c0_20 = arith.constant 0 : index
    %c0_21 = arith.constant 0 : index
    %32 = vector.load %arg8[%c0_19, %c0_20, %c0_21] : memref<4x16x16xf32, #tpu.memory_space<vmem>>, vector<1x16x16xf32>
    %33 = vector.shape_cast %32 : vector<1x16x16xf32> to vector<16x16xf32>
    %34 = vector.shape_cast %31 : vector<16x16xf32> to vector<1x16x16xf32>
    tpu.vector_store %arg8[%c0_19, %c0_20, %c0_21], %34 {strides = array<i32>} : memref<4x16x16xf32, #tpu.memory_space<vmem>>, vector<1x16x16xf32>,
    %35 = vector.extract_strided_slice %5 {offsets = [0, 0], sizes = [16, 8], strides = [1, 1]} : vector<16x32xf32> to vector<16x8xf32>
    %cst_22 = arith.constant dense<0.000000e+00> : vector<16x8xf32>
    %36 = tpu.matmul %31, %35, %cst_22 {dimension_numbers = #tpu.dot_dimension_numbers<[1], [0], [0], [1], [0, 0, 1, 1], [], []>} : vector<16x16xf32>, vector<16x8xf32>, vector<16x8xf32> -> vector<16x8xf32>
    %37 = vector.extract_strided_slice %7 {offsets = [0, 1], sizes = [16, 1], strides = [1, 1]} : vector<16x4xf32> to vector<16x1xf32>
    %38 = vector.extract_strided_slice %8 {offsets = [1, 0], sizes = [1, 16], strides = [1, 1]} : vector<4x16xf32> to vector<1x16xf32>
    %39 = vector.broadcast %37 : vector<16x1xf32> to vector<16x16xf32>
    %40 = vector.broadcast %38 : vector<1x16xf32> to vector<16x16xf32>
    %41 = arith.addf %39, %40 : vector<16x16xf32>
    %cst_23 = arith.constant 2.000000e-01 : f32
    %42 = vector.broadcast %cst_23 : f32 to vector<16x16xf32>
    %43 = arith.mulf %42, %41 : vector<16x16xf32>
    %44 = arith.maximumf %41, %43 : vector<16x16xf32>
    %cst_24 = arith.constant -9.000000e+16 : f32
    %45 = vector.broadcast %cst_24 : f32 to vector<16x16xf32>
    %46 = arith.select %11, %44, %45 : vector<16x16xi1>, vector<16x16xf32>
    %cst_25 = arith.constant dense<0xFF800000> : vector<16xf32>
    %47 = vector.multi_reduction <maximumf>, %46, %cst_25 [1] : vector<16x16xf32> to vector<16xf32>
    %48 = vector.shape_cast %47 : vector<16xf32> to vector<16x1xf32>
    %49 = vector.broadcast %48 : vector<16x1xf32> to vector<16x16xf32>
    %50 = arith.subf %46, %49 : vector<16x16xf32>
    %51 = math.exp %50 : vector<16x16xf32>
    %cst_26 = arith.constant dense<0.000000e+00> : vector<16xf32>
    %52 = vector.multi_reduction <add>, %51, %cst_26 [1] : vector<16x16xf32> to vector<16xf32>
    %53 = vector.shape_cast %52 : vector<16xf32> to vector<16x1xf32>
    %54 = tpu.reciprocal %53 : vector<16x1xf32> -> vector<16x1xf32>
    %55 = vector.broadcast %54 : vector<16x1xf32> to vector<16x16xf32>
    %56 = arith.mulf %51, %55 : vector<16x16xf32>
    %c1 = arith.constant 1 : index
    %c0_27 = arith.constant 0 : index
    %c0_28 = arith.constant 0 : index
    %57 = vector.load %arg8[%c1, %c0_27, %c0_28] : memref<4x16x16xf32, #tpu.memory_space<vmem>>, vector<1x16x16xf32>
    %58 = vector.shape_cast %57 : vector<1x16x16xf32> to vector<16x16xf32>
    %59 = vector.shape_cast %56 : vector<16x16xf32> to vector<1x16x16xf32>
    tpu.vector_store %arg8[%c1, %c0_27, %c0_28], %59 {strides = array<i32>} : memref<4x16x16xf32, #tpu.memory_space<vmem>>, vector<1x16x16xf32>,
    %60 = vector.extract_strided_slice %5 {offsets = [0, 8], sizes = [16, 8], strides = [1, 1]} : vector<16x32xf32> to vector<16x8xf32>
    %cst_29 = arith.constant dense<0.000000e+00> : vector<16x8xf32>
    %61 = tpu.matmul %56, %60, %cst_29 {dimension_numbers = #tpu.dot_dimension_numbers<[1], [0], [0], [1], [0, 0, 1, 1], [], []>} : vector<16x16xf32>, vector<16x8xf32>, vector<16x8xf32> -> vector<16x8xf32>
    %62 = vector.extract_strided_slice %7 {offsets = [0, 2], sizes = [16, 1], strides = [1, 1]} : vector<16x4xf32> to vector<16x1xf32>
    %63 = vector.extract_strided_slice %8 {offsets = [2, 0], sizes = [1, 16], strides = [1, 1]} : vector<4x16xf32> to vector<1x16xf32>
    %64 = vector.broadcast %62 : vector<16x1xf32> to vector<16x16xf32>
    %65 = vector.broadcast %63 : vector<1x16xf32> to vector<16x16xf32>
    %66 = arith.addf %64, %65 : vector<16x16xf32>
    %cst_30 = arith.constant 2.000000e-01 : f32
    %67 = vector.broadcast %cst_30 : f32 to vector<16x16xf32>
    %68 = arith.mulf %67, %66 : vector<16x16xf32>
    %69 = arith.maximumf %66, %68 : vector<16x16xf32>
    %cst_31 = arith.constant -9.000000e+16 : f32
    %70 = vector.broadcast %cst_31 : f32 to vector<16x16xf32>
    %71 = arith.select %11, %69, %70 : vector<16x16xi1>, vector<16x16xf32>
    %cst_32 = arith.constant dense<0xFF800000> : vector<16xf32>
    %72 = vector.multi_reduction <maximumf>, %71, %cst_32 [1] : vector<16x16xf32> to vector<16xf32>
    %73 = vector.shape_cast %72 : vector<16xf32> to vector<16x1xf32>
    %74 = vector.broadcast %73 : vector<16x1xf32> to vector<16x16xf32>
    %75 = arith.subf %71, %74 : vector<16x16xf32>
    %76 = math.exp %75 : vector<16x16xf32>
    %cst_33 = arith.constant dense<0.000000e+00> : vector<16xf32>
    %77 = vector.multi_reduction <add>, %76, %cst_33 [1] : vector<16x16xf32> to vector<16xf32>
    %78 = vector.shape_cast %77 : vector<16xf32> to vector<16x1xf32>
    %79 = tpu.reciprocal %78 : vector<16x1xf32> -> vector<16x1xf32>
    %80 = vector.broadcast %79 : vector<16x1xf32> to vector<16x16xf32>
    %81 = arith.mulf %76, %80 : vector<16x16xf32>
    %c2 = arith.constant 2 : index
    %c0_34 = arith.constant 0 : index
    %c0_35 = arith.constant 0 : index
    %82 = vector.load %arg8[%c2, %c0_34, %c0_35] : memref<4x16x16xf32, #tpu.memory_space<vmem>>, vector<1x16x16xf32>
    %83 = vector.shape_cast %82 : vector<1x16x16xf32> to vector<16x16xf32>
    %84 = vector.shape_cast %81 : vector<16x16xf32> to vector<1x16x16xf32>
    tpu.vector_store %arg8[%c2, %c0_34, %c0_35], %84 {strides = array<i32>} : memref<4x16x16xf32, #tpu.memory_space<vmem>>, vector<1x16x16xf32>,
    %85 = vector.extract_strided_slice %5 {offsets = [0, 16], sizes = [16, 8], strides = [1, 1]} : vector<16x32xf32> to vector<16x8xf32>
    %cst_36 = arith.constant dense<0.000000e+00> : vector<16x8xf32>
    %86 = tpu.matmul %81, %85, %cst_36 {dimension_numbers = #tpu.dot_dimension_numbers<[1], [0], [0], [1], [0, 0, 1, 1], [], []>} : vector<16x16xf32>, vector<16x8xf32>, vector<16x8xf32> -> vector<16x8xf32>
    %87 = vector.extract_strided_slice %7 {offsets = [0, 3], sizes = [16, 1], strides = [1, 1]} : vector<16x4xf32> to vector<16x1xf32>
    %88 = vector.extract_strided_slice %8 {offsets = [3, 0], sizes = [1, 16], strides = [1, 1]} : vector<4x16xf32> to vector<1x16xf32>
    %89 = vector.broadcast %87 : vector<16x1xf32> to vector<16x16xf32>
    %90 = vector.broadcast %88 : vector<1x16xf32> to vector<16x16xf32>
    %91 = arith.addf %89, %90 : vector<16x16xf32>
    %cst_37 = arith.constant 2.000000e-01 : f32
    %92 = vector.broadcast %cst_37 : f32 to vector<16x16xf32>
    %93 = arith.mulf %92, %91 : vector<16x16xf32>
    %94 = arith.maximumf %91, %93 : vector<16x16xf32>
    %cst_38 = arith.constant -9.000000e+16 : f32
    %95 = vector.broadcast %cst_38 : f32 to vector<16x16xf32>
    %96 = arith.select %11, %94, %95 : vector<16x16xi1>, vector<16x16xf32>
    %cst_39 = arith.constant dense<0xFF800000> : vector<16xf32>
    %97 = vector.multi_reduction <maximumf>, %96, %cst_39 [1] : vector<16x16xf32> to vector<16xf32>
    %98 = vector.shape_cast %97 : vector<16xf32> to vector<16x1xf32>
    %99 = vector.broadcast %98 : vector<16x1xf32> to vector<16x16xf32>
    %100 = arith.subf %96, %99 : vector<16x16xf32>
    %101 = math.exp %100 : vector<16x16xf32>
    %cst_40 = arith.constant dense<0.000000e+00> : vector<16xf32>
    %102 = vector.multi_reduction <add>, %101, %cst_40 [1] : vector<16x16xf32> to vector<16xf32>
    %103 = vector.shape_cast %102 : vector<16xf32> to vector<16x1xf32>
    %104 = tpu.reciprocal %103 : vector<16x1xf32> -> vector<16x1xf32>
    %105 = vector.broadcast %104 : vector<16x1xf32> to vector<16x16xf32>
    %106 = arith.mulf %101, %105 : vector<16x16xf32>
    %c3 = arith.constant 3 : index
    %c0_41 = arith.constant 0 : index
    %c0_42 = arith.constant 0 : index
    %107 = vector.load %arg8[%c3, %c0_41, %c0_42] : memref<4x16x16xf32, #tpu.memory_space<vmem>>, vector<1x16x16xf32>
    %108 = vector.shape_cast %107 : vector<1x16x16xf32> to vector<16x16xf32>
    %109 = vector.shape_cast %106 : vector<16x16xf32> to vector<1x16x16xf32>
    tpu.vector_store %arg8[%c3, %c0_41, %c0_42], %109 {strides = array<i32>} : memref<4x16x16xf32, #tpu.memory_space<vmem>>, vector<1x16x16xf32>,
    %110 = vector.extract_strided_slice %5 {offsets = [0, 24], sizes = [16, 8], strides = [1, 1]} : vector<16x32xf32> to vector<16x8xf32>
    %cst_43 = arith.constant dense<0.000000e+00> : vector<16x8xf32>
    %111 = tpu.matmul %106, %110, %cst_43 {dimension_numbers = #tpu.dot_dimension_numbers<[1], [0], [0], [1], [0, 0, 1, 1], [], []>} : vector<16x16xf32>, vector<16x8xf32>, vector<16x8xf32> -> vector<16x8xf32>
    %112 = tpu.concatenate %36, %61, %86, %111 in 1 : vector<16x8xf32>, vector<16x8xf32>, vector<16x8xf32>, vector<16x8xf32> -> vector<16x32xf32>
    %c0_44 = arith.constant 0 : index
    %c0_45 = arith.constant 0 : index
    %113 = vector.load %arg7[%c0_44, %c0_45] : memref<16x32xf32, #tpu.memory_space<vmem>>, vector<16x32xf32>
    tpu.vector_store %arg7[%c0_44, %c0_45], %112 {strides = array<i32>} : memref<16x32xf32, #tpu.memory_space<vmem>>, vector<16x32xf32>,
    return
  }
  func.func @transform_0(%arg0: i32) -> (i32, i32) {
    %c0_i32 = arith.constant 0 : i32
    %c0_i32_0 = arith.constant 0 : i32
    %c0_i32_1 = arith.constant 0 : i32
    return %c0_i32, %c0_i32_0 : i32, i32
  }
  func.func @transform_1(%arg0: i32) -> (i32, i32) {
    %c0_i32 = arith.constant 0 : i32
    %c0_i32_0 = arith.constant 0 : i32
    return %arg0, %c0_i32 : i32, i32
  }
  func.func @transform_2(%arg0: i32) -> (i32, i32) {
    %c0_i32 = arith.constant 0 : i32
    %c0_i32_0 = arith.constant 0 : i32
    return %arg0, %c0_i32 : i32, i32
  }
  func.func @transform_3(%arg0: i32) -> (i32, i32) {
    %c0_i32 = arith.constant 0 : i32
    %c0_i32_0 = arith.constant 0 : i32
    %c0_i32_1 = arith.constant 0 : i32
    return %c0_i32, %c0_i32_0 : i32, i32
  }
  func.func @transform_4(%arg0: i32) -> (i32, i32) {
    %c0_i32 = arith.constant 0 : i32
    %c0_i32_0 = arith.constant 0 : i32
    %c0_i32_1 = arith.constant 0 : i32
    return %c0_i32, %c0_i32_0 : i32, i32
  }
  func.func @transform_5(%arg0: i32) -> (i32, i32) {
    %c0_i32 = arith.constant 0 : i32
    %c0_i32_0 = arith.constant 0 : i32
    %c0_i32_1 = arith.constant 0 : i32
    return %c0_i32, %c0_i32_0 : i32, i32
  }
  func.func @transform_6(%arg0: i32) -> (i32, i32) {
    %c0_i32 = arith.constant 0 : i32
    %c0_i32_0 = arith.constant 0 : i32
    return %arg0, %c0_i32 : i32, i32
  }
  func.func @transform_7(%arg0: i32) -> (i32, i32, i32) {
    %c0_i32 = arith.constant 0 : i32
    %c0_i32_0 = arith.constant 0 : i32
    %c0_i32_1 = arith.constant 0 : i32
    return %c0_i32, %arg0, %c0_i32_0 : i32, i32, i32
  }
}

</mosaic_0001>

<bundles_post_ra>
// kernel: tpu_custom_call.1
= control target key start
LH: loop header
LB: loop body
LE: loop exit
PB: predicated region body
PF: predicated region fallthrough
CT: control target
= control target key end

     0   :  { %13 = vsyncpa [#allocation3], 0  ;;  %vm37_vm0 = vcmask 64512   ;;  %s1014_s0 = inlined_call_operand.vmem [shape: f32[16,8], index: 0, kind: input, shape index: {}]   ;;  %s1015_s1 = inlined_call_operand.vmem [shape: f32[16,8], index: 1, kind: input, shape index: {}]   ;;  %s1016_s2 = inlined_call_operand.vmem [shape: f32[16,16], index: 2, kind: input, shape index: {}]   ;;  %s1017_s3 = inlined_call_operand.vmem [shape: f32[8,32], index: 3, kind: input, shape index: {}]   ;;  %s1018_s4 = inlined_call_operand.vmem [shape: f32[32,4], index: 4, kind: input, shape index: {}]   ;;  %s1019_s5 = inlined_call_operand.vmem [shape: f32[4,32], index: 5, kind: input, shape index: {}]   ;;  %s1020_s6 = inlined_call_operand.hbm [shape: f32[16,32], index: 6, kind: output, shape index: {0}]   ;;  %s1021_s7 = inlined_call_operand.hbm [shape: f32[4,16,16], index: 7, kind: output, shape index: {1}]  }
   0x1   :  { %v31_v0 = vld [vmem:[%s1017_s3] sm:$0xff]  ;;  %v35_v3 = vld [vmem:[%s1018_s4 + $0x18] sm:$0xff]  ;;  %v34_v4 = vld [vmem:[%s1018_s4 + $0x10] sm:$0xff] }
   0x2   :  { %v29_v1 = vld [vmem:[%s1015_s1] sm:$0xff]  ;;  %88 = vmatpush.msra.mxu1 %v31_v0  ;;  %59 = vmatpush.msra.mxu0 %v31_v0 }
   0x3   :  { %v27_v2 = vld [vmem:[%s1014_s0] sm:$0xff]  ;;  %638 = vmatmul.msk.f32.vlgmr.msra.gmra.mxu1 %vm37_vm0, %v29_v1 }
   0x4   :  { %636 = vmatmul.msk.f32.vlgmr.msra.gmra.mxu0 %vm37_vm0, %v27_v2 }
   0x5   :  { %14 = vsyncpa [#allocation5], 0  ;;  %115 = vmatpush.msra.mxu2 %v35_v3  ;;  %v33_v5 = vld [vmem:[%s1018_s4 + $0x8] sm:$0xff]  ;;  %v32_v8 = vld [vmem:[%s1018_s4] sm:$0xff]  ;;  %v774_v9 = vmov 3   ;;  %v775_v10 = vmov 2  }
   0x6   :  { %v30_v6 = vld [vmem:[%s1015_s1 + $0x8] sm:$0xff]  ;;  %666 = vset.pattern.permute.xlu0 %v774_v9  ;;  %668 = vset.pattern.permute.xlu1 %v775_v10  ;;  %vm96_vm1 = vcmask 261120   ;;  %v36_v15 = vld [vmem:[%s1019_s5] sm:$0xf]  ;;  %v776_v16 = vmov 1   ;;  %v777_v19 = vmov 0  }
   0x7   :  { %116 = vmatpush.msra.mxu2 %v34_v4  ;;  %v28_v7 = vld [vmem:[%s1014_s0 + $0x8] sm:$0xff]  ;;  %670 = vset.pattern.permute.xlu2 %v776_v16  ;;  %v155_v31 = vld [vmem:[%s1016_s2] sm:$0xff]  ;;  %vm178_vm3 = vcmask 130048   ;;  %s779_s20 = smov 112   ;;  %s780_s21 = smov 120  }
   0x8   :  { %vm157_vm2 = vcmp.gt.f32.partialorder %v155_v31, 0.0  ;;  %v156_v41 = vld [vmem:[%s1016_s2 + $0x8] sm:$0xff]  ;;  %s778_s2 = smov 104   ;;  %s781_s22 = smov 8  }
   0x9   :  { %117 = vmatpush.msra.mxu2 %v33_v5  ;;  %vm158_vm4 = vcmp.gt.f32.partialorder %v156_v41, 0.0  ;;  %s782_s23 = smov 16   ;;  %s619_s26 = sshll.u32 %s1021_s7, 4  ;;  %s620_s26 = int_to_ptr.hbm [resolvable:$true] %s619_s26 }
   0xa   :  { %s783_s27 = smov [#allocation4]   ;;  %s784_s29 = smov 128  }
   0xb   :  { %639 = vmatmul.msk.f32.gmra.mxu1 %vm37_vm0, %v30_v6  ;;  %118 = vmatpush.msra.mxu2 %v32_v8  ;;  %s617_s28 = sshll.u32 %s783_s27, 4  ;;  %s785_s30 = smov 24   ;;  %s618_s28 = int_to_ptr.vmem [resolvable:$true] %s617_s28 }
   0xc   :  { %637 = vmatmul.msk.f32.gmra.mxu0 %vm37_vm0, %v28_v7  ;;  %s786_s7 = smov [#allocation2]   ;;  %s606_s10 = sshll.u32 %s1020_s6, 4  ;;  %s607_s10 = int_to_ptr.hbm [resolvable:$true] %s606_s10 }
   0xd   :  { %s604_s8 = sshll.u32 %s786_s7, 4  ;;  %s605_s8 = int_to_ptr.vmem [resolvable:$true] %s604_s8 }
  0x80   :  { %v90_v11 = vpop.f32.mrf.mxu1 }
  0x81   :  { %v858_v12 = vpop.f32.mrf.mxu0  ;;  %640 = vmatmul.msk.f32.vlgmr.msra.gmra.mxu2 %vm96_vm1, %v90_v11 }
  0x88   :  { %v93_v13 = vpop.f32.mrf.mxu1 }
  0x89   :  { %v861_v14 = vpop.f32.mrf.mxu0  ;;  %641 = vmatmul.msk.f32.gmra.mxu2 %vm96_vm1, %v93_v13 }
  0x8a   :  { %642 = vmatpush.xpose.msk.msra.mxu3 %vm96_vm1, %v861_v14 }
  0x8e   :  { %643 = vmatpush.xpose.msk.msra.mxu3 %vm96_vm1, %v858_v12 }
  0x91   :  { %644 = vmatmul.msk.f32.vlgmr.msra.gmra.mxu3 %vm96_vm1, %v36_v15 }
  0x92   :  { %249 = vmatpush.msrb.mxu3 %v861_v14 }
  0x94   :  { %250 = vmatpush.msrb.mxu3 %v858_v12 }
 0x104   :  { %v120_v17 = vpop.f32.mrf.mxu2 }
 0x105   :  { %362 = vperm.xlu1 %668, %v120_v17   ;;  %465 = vperm.xlu0 %666, %v120_v17  }
 0x10c   :  { %v123_v18 = vpop.f32.mrf.mxu2 }
 0x10d   :  { %669 = vset.pattern.permute.xlu1 %v774_v9  ;;  %667 = vset.pattern.permute.xlu0 %v776_v16 }
 0x10e   :  { %263 = vperm.xlu2 %670, %v123_v18   ;;  %259 = vperm.xlu0 %667, %v120_v17  }
 0x10f   :  { %469 = vperm.xlu1 %669, %v123_v18  }
 0x114   :  { %v152_v21 = vpop.f32.mrf.mxu3 }
 0x115   :  { %v266_v23 = vperm.slane %v152_v21, 1  ;;  %v472_v24 = vperm.slane %v152_v21, 3  ;;  %v369_v25 = vperm.slane %v152_v21, 2  ;;  %v169_v37 = vperm.slane %v152_v21, 0 }
 0x116   :  { %671 = vset.pattern.permute.xlu2 %v775_v10  ;;  %689 = vset.pattern.permute.xlu0 %v774_v9 }
 0x117   :  { %366 = vperm.xlu2 %671, %v123_v18   ;;  %672 = vset.pattern.permute.xlu1 %v777_v19 }
 0x118   :  { %161 = vperm.xlu1 %672, %v120_v17  }
 0x11f   :  { %673 = vset.pattern.permute.xlu2 %v777_v19 }
 0x120   :  { %166 = vperm.xlu2 %673, %v123_v18  }
 0x168   :  { %v264_v20 = vpop.permute.xlu2 %263 }
 0x169   :  { %v268_v28 = vadd.f32 %v266_v23, %v264_v20 }
 0x16b   :  { %v270_v34 = vmul.f32 0.2, %v268_v28 }
 0x16d   :  { %v272_v44 = vmax.f32 %v268_v28, %v270_v34 }
 0x16f   :  { %v274_v54 = vsel %vm158_vm4, %v272_v44, -9e+16 }
 0x170   :  { %v278_v58 = vsel %vm178_vm3, %v274_v54, -inf }
 0x171   :  { %v367_v22 = vpop.permute.xlu2 %366 }
 0x172   :  { %v371_v47 = vadd.f32 %v369_v25, %v367_v22 }
 0x174   :  { %v373_v55 = vmul.f32 0.2, %v371_v47 }
 0x176   :  { %v375_v63 = vmax.f32 %v371_v47, %v373_v55 }
 0x177   :  { %v363_v26 = vpop.permute.xlu1 %362  ;;  %v466_v27 = vpop.permute.xlu0 %465 }
 0x178   :  { %v370_v29 = vadd.f32 %v369_v25, %v363_v26  ;;  %v473_v30 = vadd.f32 %v472_v24, %v466_v27  ;;  %v377_v5 = vsel %vm158_vm4, %v375_v63, -9e+16 }
 0x179   :  { %v381_v8 = vsel %vm178_vm3, %v377_v5, -inf }
 0x17a   :  { %v372_v32 = vmul.f32 0.2, %v370_v29  ;;  %v475_v33 = vmul.f32 0.2, %v473_v30  ;;  %v167_v38 = vpop.permute.xlu2 %166 }
 0x17b   :  { %v171_v45 = vadd.f32 %v169_v37, %v167_v38 }
 0x17c   :  { %v374_v35 = vmax.f32 %v370_v29, %v372_v32  ;;  %v477_v36 = vmax.f32 %v473_v30, %v475_v33 }
 0x17d   :  { %v173_v52 = vmul.f32 0.2, %v171_v45 }
 0x17e   :  { %v479_v39 = vsel %vm157_vm2, %v477_v36, -9e+16  ;;  %v376_v40 = vsel %vm157_vm2, %v374_v35, -9e+16 }
 0x17f   :  { %v481_v42 = vsel %vm178_vm3, %v479_v39, -inf  ;;  %v378_v43 = vsel %vm178_vm3, %v376_v40, -inf  ;;  %v175_v60 = vmax.f32 %v171_v45, %v173_v52 }
 0x180   :  { %v260_v46 = vpop.permute.xlu0 %259  ;;  %482 = vmax.xlane.f32.xlu0 %v481_v42  ;;  %379 = vmax.xlane.f32.xlu2 %v378_v43  ;;  %v674_v43 = vpack.i.bf16 %v858_v12, %v861_v14 }
 0x181   :  { %v267_v48 = vadd.f32 %v266_v23, %v260_v46  ;;  %v470_v49 = vpop.permute.xlu1 %469  ;;  %v891_v3 = vsel %vm158_vm4, %v175_v60, -9e+16 }
 0x182   :  { %v474_v50 = vadd.f32 %v472_v24, %v470_v49  ;;  %v182_v7 = vsel %vm178_vm3, %v891_v3, -inf }
 0x183   :  { %v269_v51 = vmul.f32 0.2, %v267_v48 }
 0x184   :  { %v476_v53 = vmul.f32 0.2, %v474_v50 }
 0x185   :  { %v271_v56 = vmax.f32 %v267_v48, %v269_v51 }
 0x186   :  { %v478_v57 = vmax.f32 %v474_v50, %v476_v53 }
 0x187   :  { %v273_v59 = vsel %vm157_vm2, %v271_v56, -9e+16 }
 0x188   :  { %279 = vmax.xlane.f32.xlu0 %v278_v58  ;;  %v480_v61 = vsel %vm158_vm4, %v478_v57, -9e+16  ;;  %v275_v62 = vsel %vm178_vm3, %v273_v59, -inf }
 0x189   :  { %v484_v0 = vsel %vm178_vm3, %v480_v61, -inf  ;;  %276 = vmax.xlane.f32.xlu1 %v275_v62 }
 0x18a   :  { %v162_v1 = vpop.permute.xlu1 %161  ;;  %485 = vmax.xlane.f32.xlu2 %v484_v0 }
 0x18b   :  { %v170_v2 = vadd.f32 %v169_v37, %v162_v1 }
 0x18d   :  { %v172_v4 = vmul.f32 0.2, %v170_v2 }
 0x18f   :  { %v174_v6 = vmax.f32 %v170_v2, %v172_v4 }
 0x190   :  { %183 = vmax.xlane.f32.xlu0 %v182_v7 }
 0x191   :  { %382 = vmax.xlane.f32.xlu1 %v381_v8  ;;  %v176_v9 = vsel %vm157_vm2, %v174_v6, -9e+16 }
 0x192   :  { %v179_v10 = vsel %vm178_vm3, %v176_v9, -inf }
 0x193   :  { %180 = vmax.xlane.f32.xlu2 %v179_v10 }
 0x1f3   :  { %v483_v11 = vpop.xlane.xlu0 %482  ;;  %v380_v13 = vpop.xlane.xlu2 %379 }
 0x1f4   :  { %v487_v15 = vsub.f32 %v479_v39, %v483_v11  ;;  %v384_v16 = vsub.f32 %v376_v40, %v380_v13 }
 0x1f6   :  { %v489_v17 = vmul.f32 1.442695, %v487_v15  ;;  %v386_v18 = vmul.f32 1.442695, %v384_v16 }
 0x1f8   :  { %690 = vpow2.f32 %v489_v17 }
 0x1f9   :  { %692 = vpow2.f32 %v386_v18 }
 0x1fb   :  { %v280_v19 = vpop.xlane.xlu0 %279 }
 0x1fc   :  { %v277_v20 = vpop.xlane.xlu1 %276  ;;  %v282_v26 = vsub.f32 %v274_v54, %v280_v19 }
 0x1fd   :  { %v486_v21 = vpop.xlane.xlu2 %485  ;;  %v281_v22 = vsub.f32 %v273_v59, %v277_v20 }
 0x1fe   :  { %v899_v23 = vpop.eup %690  ;;  %v488_v24 = vsub.f32 %v480_v61, %v486_v21  ;;  %v285_v31 = vmul.f32 1.442695, %v282_v26 }
 0x1ff   :  { %v901_v25 = vpop.eup %692  ;;  %v283_v27 = vmul.f32 1.442695, %v281_v22  ;;  %v493_v28 = vsel %vm178_vm3, %v899_v23, 0.0 }
 0x200   :  { %v491_v29 = vmul.f32 1.442695, %v488_v24  ;;  %494 = vadd.xlane.f32.xlu1 %v493_v28  ;;  %v390_v30 = vsel %vm178_vm3, %v901_v25, 0.0 }
 0x201   :  { %694 = vpow2.f32 %v283_v27  ;;  %391 = vadd.xlane.f32.xlu0 %v390_v30 }
 0x202   :  { %696 = vpow2.f32 %v491_v29 }
 0x203   :  { %698 = vpow2.f32 %v285_v31  ;;  %v184_v45 = vpop.xlane.xlu0 %183 }
 0x204   :  { %v383_v32 = vpop.xlane.xlu1 %382  ;;  %v186_v47 = vsub.f32 %v891_v3, %v184_v45 }
 0x205   :  { %v385_v33 = vsub.f32 %v377_v5, %v383_v32 }
 0x206   :  { %v181_v44 = vpop.xlane.xlu2 %180  ;;  %v189_v49 = vmul.f32 1.442695, %v186_v47 }
 0x207   :  { %v907_v34 = vpop.eup %694  ;;  %v388_v35 = vmul.f32 1.442695, %v385_v33  ;;  %v185_v46 = vsub.f32 %v176_v9, %v181_v44 }
 0x208   :  { %v909_v36 = vpop.eup %696  ;;  %v287_v37 = vsel %vm178_vm3, %v907_v34, 0.0 }
 0x209   :  { %700 = vpow2.f32 %v388_v35  ;;  %v496_v38 = vsel %vm178_vm3, %v909_v36, 0.0  ;;  %288 = vadd.xlane.f32.xlu2 %v287_v37  ;;  %v915_v39 = vpop.eup %698  ;;  %v187_v48 = vmul.f32 1.442695, %v185_v46 }
 0x20a   :  { %497 = vadd.xlane.f32.xlu1 %v496_v38  ;;  %v290_v42 = vsel %vm178_vm3, %v915_v39, 0.0 }
 0x20b   :  { %702 = vpow2.f32 %v187_v48 }
 0x20c   :  { %704 = vpow2.f32 %v189_v49 }
 0x20f   :  { %v917_v40 = vpop.eup %700 }
 0x210   :  { %v393_v41 = vsel %vm178_vm3, %v917_v40, 0.0 }
 0x211   :  { %394 = vadd.xlane.f32.xlu0 %v393_v41  ;;  %291 = vadd.xlane.f32.xlu2 %v290_v42  ;;  %v926_v50 = vpop.eup %702 }
 0x212   :  { %v928_v51 = vpop.eup %704  ;;  %v191_v12 = vsel %vm178_vm3, %v926_v50, 0.0 }
 0x213   :  { %v194_v14 = vsel %vm178_vm3, %v928_v51, 0.0 }
 0x223   :  { %675 = vrot.lane.b32.xlu1 %v674_v43, %s778_s2 }
 0x225   :  { %685 = vrot.lane.b32.xlu0 %v674_v43, %s779_s20 }
 0x229   :  { %680 = vrot.lane.b32.xlu2 %v674_v43, %s780_s21 }
 0x24d   :  { %192 = vadd.xlane.f32.xlu1 %v191_v12 }
 0x24f   :  { %195 = vadd.xlane.f32.xlu0 %v194_v14 }
 0x273   :  { %v495_v52 = vpop.xlane.xlu1 %494 }
 0x274   :  { %706 = vrcp.f32 %v495_v52  ;;  %v392_v53 = vpop.xlane.xlu0 %391  ;;  %v510_v61 = vand.u32 2147483648, %v495_v52  ;;  %v508_v0 = vand.u32 2147483647, %v495_v52  ;;  %vm504_vm6 = vweird.f32 %v495_v52 }
 0x275   :  { %708 = vrcp.f32 %v392_v53  ;;  %v405_v5 = vand.u32 2147483647, %v392_v53  ;;  %v407_v6 = vand.u32 2147483648, %v392_v53  ;;  %vm401_vm10 = vweird.f32 %v392_v53 }
 0x276   :  { %v511_v3 = vor.u32 1.1754944e-38, %v510_v61  ;;  %vm509_vm9 = vcmp.eq.f32.partialorder %v508_v0, 8.507059e+37 }
 0x277   :  { %vm406_vm12 = vcmp.eq.f32.partialorder %v405_v5, 8.507059e+37  ;;  %v408_v19 = vor.u32 1.1754944e-38, %v407_v6 }
 0x27a   :  { %v707_v54 = vpop.eup %706 }
 0x27b   :  { %v709_v55 = vpop.eup %708  ;;  %v500_v56 = vmul.f32 %v707_v54, %v495_v52  ;;  %vm505_vm5 = vweird.f32 %v707_v54 }
 0x27c   :  { %v397_v57 = vmul.f32 %v709_v55, %v392_v53  ;;  %v289_v58 = vpop.xlane.xlu2 %288  ;;  %vm402_vm7 = vweird.f32 %v709_v55  ;;  %vm506_vm8 = vmor %vm504_vm6, %vm505_vm5 }
 0x27d   :  { %v501_v59 = vsub.f32 1.0, %v500_v56  ;;  %v934_v60 = vpop.xlane.xlu1 %497  ;;  %710 = vrcp.f32 %v289_v58  ;;  %vm937_vm11 = vmor %vm401_vm10, %vm402_vm7  ;;  %v302_v22 = vand.u32 2147483647, %v289_v58  ;;  %v304_v24 = vand.u32 2147483648, %v289_v58 }
 0x27e   :  { %v398_v62 = vsub.f32 1.0, %v397_v57  ;;  %712 = vrcp.f32 %v934_v60  ;;  %v524_v27 = vand.u32 2147483648, %v934_v60  ;;  %v522_v32 = vand.u32 2147483647, %v934_v60 }
 0x27f   :  { %v502_v63 = vmul.f32 %v707_v54, %v501_v59  ;;  %vm298_vm14 = vweird.f32 %v289_v58  ;;  %vm518_vm2 = vweird.f32 %v934_v60  ;;  %vm303_vm5 = vcmp.eq.f32.partialorder %v302_v22, 8.507059e+37 }
 0x280   :  { %v399_v1 = vmul.f32 %v709_v55, %v398_v62  ;;  %v525_v41 = vor.u32 1.1754944e-38, %v524_v27  ;;  %vm523_vm7 = vcmp.eq.f32.partialorder %v522_v32, 8.507059e+37 }
 0x281   :  { %v503_v2 = vadd.f32 %v707_v54, %v502_v63 }
 0x282   :  { %v400_v4 = vadd.f32 %v709_v55, %v399_v1 }
 0x283   :  { %v711_v7 = vpop.eup %710  ;;  %v507_v8 = vsel %vm506_vm8, %v707_v54, %v503_v2 }
 0x284   :  { %v713_v9 = vpop.eup %712  ;;  %v294_v11 = vmul.f32 %v711_v7, %v289_v58  ;;  %v941_v13 = vpop.xlane.xlu0 %394  ;;  %v512_v16 = vsel %vm509_vm9, %v511_v3, %v507_v8  ;;  %v404_v18 = vsel %vm937_vm11, %v709_v55, %v400_v4  ;;  %vm299_vm13 = vweird.f32 %v711_v7 }
 0x285   :  { %v943_v15 = vpop.xlane.xlu2 %291  ;;  %v514_v17 = vmul.f32 %v713_v9, %v934_v60  ;;  %714 = vrcp.f32 %v941_v13  ;;  %v951_v26 = vmul.f32 %v899_v23, %v512_v16  ;;  %v409_v29 = vsel %vm406_vm12, %v408_v19, %v404_v18  ;;  %vm300_vm4 = vmor %vm298_vm14, %vm299_vm13 }
 0x286   :  { %v295_v20 = vsub.f32 1.0, %v294_v11  ;;  %716 = vrcp.f32 %v943_v15  ;;  %v957_v31 = vmul.f32 %v901_v25, %v409_v29  ;;  %vm519_vm15 = vweird.f32 %v713_v9 }
 0x287   :  { %v515_v21 = vsub.f32 1.0, %v514_v17  ;;  %530 = vst.msk [vmem:[#allocation4 + $0x30] sm:$0xff] %vm178_vm3, %v951_v26  ;;  %v305_v23 = vor.u32 1.1754944e-38, %v304_v24  ;;  %vm520_vm6 = vmor %vm518_vm2, %vm519_vm15  ;;  %v421_v48 = vand.u32 2147483648, %v941_v13  ;;  %v318_v52 = vand.u32 2147483648, %v943_v15 }
 0x288   :  { %v296_v28 = vmul.f32 %v711_v7, %v295_v20  ;;  %427 = vst.msk [vmem:[#allocation4 + $0x20] sm:$0xff] %vm178_vm3, %v957_v31  ;;  %v419_v57 = vand.u32 2147483647, %v941_v13  ;;  %vm415_vm10 = vweird.f32 %v941_v13  ;;  %vm312_vm11 = vweird.f32 %v943_v15 }
 0x289   :  { %v516_v30 = vmul.f32 %v713_v9, %v515_v21  ;;  %v422_v60 = vor.u32 1.1754944e-38, %v421_v48 }
 0x28a   :  { %v297_v33 = vadd.f32 %v711_v7, %v296_v28  ;;  %vm420_vm14 = vcmp.eq.f32.partialorder %v419_v57, 8.507059e+37 }
 0x28b   :  { %v715_v35 = vpop.eup %714  ;;  %v517_v37 = vadd.f32 %v713_v9, %v516_v30 }
 0x28c   :  { %v717_v38 = vpop.eup %716  ;;  %v411_v25 = vmul.f32 %v715_v35, %v941_v13  ;;  %v301_v43 = vsel %vm300_vm4, %v711_v7, %v297_v33  ;;  %vm416_vm8 = vweird.f32 %v715_v35 }
 0x28d   :  { %v681_v42 = vpop.permute.xlu2 %680  ;;  %v308_v44 = vmul.f32 %v717_v38, %v943_v15  ;;  %v306_v46 = vsel %vm303_vm5, %v305_v23, %v301_v43  ;;  %v521_v12 = vsel %vm520_vm6, %v713_v9, %v517_v37  ;;  %vm313_vm9 = vweird.f32 %v717_v38  ;;  %vm417_vm12 = vmor %vm415_vm10, %vm416_vm8 }
 0x28e   :  { %v682_v45 = vunpack.i.l.bf16 %v681_v42  ;;  %v412_v47 = vsub.f32 1.0, %v411_v25  ;;  %v321_v49 = vmul.f32 %v907_v34, %v306_v46  ;;  %v683_v53 = vunpack.i.h.bf16 %v681_v42  ;;  %vm314_vm13 = vmor %vm312_vm11, %vm313_vm9 }
 0x28f   :  { %v309_v14 = vsub.f32 1.0, %v308_v44  ;;  %v526_v54 = vsel %vm523_vm7, %v525_v41, %v521_v12  ;;  %v316_v34 = vand.u32 2147483647, %v943_v15  ;;  %vm595_vm11 = vcmask 195584  }
 0x290   :  { %352 = vmatpush.msrb.mxu0 %v682_v45  ;;  %v413_v55 = vmul.f32 %v715_v35, %v412_v47  ;;  %324 = vst.msk [vmem:[#allocation4 + $0x10] sm:$0xff] %vm178_vm3, %v321_v49  ;;  %v528_v56 = vmul.f32 %v909_v36, %v526_v54  ;;  %v319_v36 = vor.u32 1.1754944e-38, %v318_v52 }
 0x291   :  { %v310_v58 = vmul.f32 %v717_v38, %v309_v14  ;;  %vm317_vm15 = vcmp.eq.f32.partialorder %v316_v34, 8.507059e+37 }
 0x292   :  { %353 = vmatpush.msrb.mxu0 %v683_v53  ;;  %531 = vst.msk [vmem:[#allocation4 + $0x38] sm:$0xff] %vm178_vm3, %v528_v56  ;;  %v414_v59 = vadd.f32 %v715_v35, %v413_v55 }
 0x293   :  { %647 = vmatmul.msk.f32.vlgmr.msrb.gmra.mxu0 %vm178_vm3, %v321_v49  ;;  %v311_v61 = vadd.f32 %v717_v38, %v310_v58 }
 0x294   :  { %v418_v62 = vsel %vm417_vm12, %v715_v35, %v414_v59 }
 0x295   :  { %v676_v63 = vpop.permute.xlu1 %675  ;;  %v315_v0 = vsel %vm314_vm13, %v717_v38, %v311_v61  ;;  %v423_v1 = vsel %vm420_vm14, %v422_v60, %v418_v62 }
 0x296   :  { %v677_v2 = vunpack.i.l.bf16 %v676_v63  ;;  %v320_v3 = vsel %vm317_vm15, %v319_v36, %v315_v0  ;;  %v425_v4 = vmul.f32 %v917_v40, %v423_v1  ;;  %v678_v7 = vunpack.i.h.bf16 %v676_v63 }
 0x297   :  { %v686_v5 = vpop.permute.xlu0 %685  ;;  %v322_v6 = vmul.f32 %v915_v39, %v320_v3 }
 0x298   :  { %558 = vmatpush.msrb.mxu2 %v677_v2  ;;  %v687_v8 = vunpack.i.l.bf16 %v686_v5  ;;  %428 = vst.msk [vmem:[#allocation4 + $0x28] sm:$0xff] %vm178_vm3, %v425_v4  ;;  %v688_v9 = vunpack.i.h.bf16 %v686_v5 }
 0x299   :  { %325 = vst.msk [vmem:[#allocation4 + $0x18] sm:$0xff] %vm178_vm3, %v322_v6 }
 0x29a   :  { %559 = vmatpush.msrb.mxu2 %v678_v7  ;;  %455 = vmatpush.msrb.mxu1 %v687_v8 }
 0x29b   :  { %648 = vmatmul.msk.f32.gmra.mxu0 %vm178_vm3, %v322_v6  ;;  %651 = vmatmul.msk.f32.vlgmr.msrb.gmra.mxu2 %vm178_vm3, %v951_v26 }
 0x29c   :  { %456 = vmatpush.msrb.mxu1 %v688_v9 }
 0x29d   :  { %649 = vmatmul.msk.f32.vlgmr.msrb.gmra.mxu1 %vm178_vm3, %v957_v31 }
 0x2a3   :  { %652 = vmatmul.msk.f32.gmra.mxu2 %vm178_vm3, %v528_v56 }
 0x2a5   :  { %650 = vmatmul.msk.f32.gmra.mxu1 %vm178_vm3, %v425_v4 }
 0x2c0   :  { %v193_v39 = vpop.xlane.xlu1 %192 }
 0x2c1   :  { %718 = vrcp.f32 %v193_v39  ;;  %v208_v17 = vand.u32 2147483648, %v193_v39  ;;  %v206_v19 = vand.u32 2147483647, %v193_v39  ;;  %vm202_vm4 = vweird.f32 %v193_v39 }
 0x2c2   :  { %v196_v40 = vpop.xlane.xlu0 %195 }
 0x2c3   :  { %720 = vrcp.f32 %v196_v40  ;;  %v222_v21 = vand.u32 2147483648, %v196_v40  ;;  %v220_v26 = vand.u32 2147483647, %v196_v40  ;;  %v209_v27 = vor.u32 1.1754944e-38, %v208_v17 }
 0x2c4   :  { %vm207_vm7 = vcmp.eq.f32.partialorder %v206_v19, 8.507059e+37  ;;  %vm216_vm8 = vweird.f32 %v196_v40 }
 0x2c5   :  { %v223_v30 = vor.u32 1.1754944e-38, %v222_v21  ;;  %vm221_vm10 = vcmp.eq.f32.partialorder %v220_v26, 8.507059e+37 }
 0x2c7   :  { %v719_v10 = vpop.eup %718 }
 0x2c8   :  { %v198_v11 = vmul.f32 %v719_v10, %v193_v39  ;;  %vm203_vm2 = vweird.f32 %v719_v10 }
 0x2c9   :  { %v721_v13 = vpop.eup %720  ;;  %vm204_vm6 = vmor %vm202_vm4, %vm203_vm2 }
 0x2ca   :  { %v199_v15 = vsub.f32 1.0, %v198_v11  ;;  %v212_v16 = vmul.f32 %v721_v13, %v196_v40  ;;  %vm217_vm5 = vweird.f32 %v721_v13 }
 0x2cb   :  { %vm218_vm9 = vmor %vm216_vm8, %vm217_vm5 }
 0x2cc   :  { %v200_v18 = vmul.f32 %v719_v10, %v199_v15  ;;  %v213_v20 = vsub.f32 1.0, %v212_v16 }
 0x2ce   :  { %v201_v22 = vadd.f32 %v719_v10, %v200_v18  ;;  %v214_v24 = vmul.f32 %v721_v13, %v213_v20 }
 0x2d0   :  { %v215_v28 = vadd.f32 %v721_v13, %v214_v24  ;;  %v205_v29 = vsel %vm204_vm6, %v719_v10, %v201_v22 }
 0x2d1   :  { %v210_v31 = vsel %vm207_vm7, %v209_v27, %v205_v29 }
 0x2d2   :  { %v225_v32 = vmul.f32 %v926_v50, %v210_v31  ;;  %v219_v33 = vsel %vm218_vm9, %v721_v13, %v215_v28 }
 0x2d3   :  { %v224_v35 = vsel %vm221_vm10, %v223_v30, %v219_v33 }
 0x2d4   :  { %227 = vst.msk [vmem:[#allocation4] sm:$0xff] %vm178_vm3, %v225_v32  ;;  %645 = vmatmul.msk.f32.vlgmr.msrb.gmra.mxu3 %vm178_vm3, %v225_v32  ;;  %v226_v23 = vmul.f32 %v928_v51, %v224_v35 }
 0x2d6   :  { %228 = vst.msk [vmem:[#allocation4 + $0x8] sm:$0xff] %vm178_vm3, %v226_v23 }
 0x2d7   :  { %625 = dma.vmem_to_hbm [thread:$0]  %s618_s28, 1024, %s620_s26, [#allocation5], %s784_s29, %s784_s29, %s781_s22  }
 0x2dc   :  { %646 = vmatmul.msk.f32.gmra.mxu3 %vm178_vm3, %v226_v23 }
 0x310   :  { %v355_v37 = vpop.f32.mrf.mxu0 }
 0x311   :  { %569 = vrot.lane.b32.xlu2 %v355_v37, %s781_s22 }
 0x318   :  { %v358_v51 = vpop.f32.mrf.mxu0 }
 0x31a   :  { %v458_v38 = vpop.f32.mrf.mxu1 }
 0x31b   :  { %577 = vrot.lane.b32.xlu2 %v458_v38, %s782_s23 }
 0x31e   :  { %v561_v50 = vpop.f32.mrf.mxu2 }
 0x322   :  { %v461_v25 = vpop.f32.mrf.mxu1 }
 0x323   :  { %571 = vrot.lane.b32.xlu2 %v358_v51, %s781_s22 }
 0x326   :  { %v564_v41 = vpop.f32.mrf.mxu2 }
 0x327   :  { %587 = vrot.lane.b32.xlu1 %v564_v41, %s785_s30 }
 0x32b   :  { %579 = vrot.lane.b32.xlu2 %v461_v25, %s782_s23 }
 0x333   :  { %585 = vrot.lane.b32.xlu2 %v561_v50, %s785_s30 }
 0x357   :  { %v252_v46 = vpop.f32.mrf.mxu3 }
 0x35f   :  { %v255_v14 = vpop.f32.mrf.mxu3 }
 0x36b   :  { %v570_v42 = vpop.permute.xlu2 %569 }
 0x36c   :  { %v591_v47 = vsel %vm37_vm0, %v252_v46, %v570_v42 }
 0x375   :  { %v578_v43 = vpop.permute.xlu2 %577 }
 0x376   :  { %v593_v48 = vsel %vm178_vm3, %v591_v47, %v578_v43 }
 0x37d   :  { %v572_v44 = vpop.permute.xlu2 %571 }
 0x37e   :  { %v592_v52 = vsel %vm37_vm0, %v255_v14, %v572_v44 }
 0x385   :  { %v580_v45 = vpop.permute.xlu2 %579 }
 0x386   :  { %v594_v53 = vsel %vm178_vm3, %v592_v52, %v580_v45 }
 0x38d   :  { %v586_v49 = vpop.permute.xlu2 %585 }
 0x38e   :  { %v596_v12 = vsel %vm595_vm11, %v593_v48, %v586_v49 }
 0x38f   :  { %598 = vst.msk [vmem:[#allocation2] sm:$0xff] %vm96_vm1, %v596_v12 }
 0x399   :  { %v588_v54 = vpop.permute.xlu1 %587 }
 0x39a   :  { %v597_v55 = vsel %vm595_vm11, %v594_v53, %v588_v54 }
 0x39b   :  { %599 = vst.msk [vmem:[#allocation2 + $0x8] sm:$0xff] %vm96_vm1, %v597_v55 }
 0x39c   :  { %612 = dma.vmem_to_hbm [thread:$0]  %s605_s8, 256, %s607_s10, [#allocation3], %s784_s29, %s784_s29, %s781_s22  }
 0x39d   :  { %770 = dma.done.wait [#allocation3], 256  }
 0x39e   :  { %771 = vsyncadd [#allocation3], 4294967040 }
 0x39f   :  { %772 = dma.done.wait [#allocation5], 1024  }
 0x3a0   :  { %773 = vsyncadd [#allocation5], 4294966272 }
 0x3a1   :  { %634 = vsyncpa [#allocation3], 1 }
 0x3a2   :  { %635 = vsyncpa [#allocation5], 1 }

</bundles_post_ra>
